<compile_context>
chip_gen: v5e
topology: v5e:2x2
jax: 0.10.0
libtpu: 0.0.40
codegen_flags: <defaults>
</compile_context>

<pallas_src>
import jax
import jax.numpy as jnp
from jax.experimental import pallas as pl
from jax.experimental.pallas import tpu as pltpu


def decoder_kernel(x_ref, w1_ref, b1_ref, w2_ref, b2_ref, out_ref):
    # In-kernel bf16 cast of the activation tile (VPU work on VMEM-resident data).
    x_bf = x_ref[...].astype(jnp.bfloat16)
    # hidden = relu(x @ W1 + b1)   (bf16 MXU inputs, f32 accumulation)
    h = jnp.dot(x_bf, w1_ref[...], preferred_element_type=jnp.float32)
    h = jnp.maximum(h + b1_ref[...], 0.0)          # (1, hidden) broadcasts over batch
    # out = sigmoid(h @ W2 + b2)
    o = jnp.dot(h.astype(jnp.bfloat16), w2_ref[...],
                preferred_element_type=jnp.float32)
    o = o + b2_ref[...]                            # (1, d_out) broadcasts over batch
    out_ref[...] = jax.nn.sigmoid(o).astype(out_ref.dtype)


def _round_up(n, m):
    return ((n + m - 1) // m) * m


def _pick_batch_tile(B):
    if B <= 16:
        # Single block equal to the full batch dim (legal: equals the array dim).
        return B
    # Large tiles (512-1024) push mem-bound kernels toward the HBM roofline,
    # but cap so the grid still has >= 2 steps (both v7x TCs engaged, and
    # DMA/compute pipelining stays active). Multiple of 16 keeps sublane
    # packing happy for bf16 on every generation.
    return min(1024, _round_up((B + 1) // 2, 16))


def decoder_forward(x, w1, b1, w2, b2):
    """x: (B, latent_dim + n_classes); returns (B, output_dim) in float32."""
    B, d_in = x.shape
    hidden = w1.shape[1]
    d_out = w2.shape[1]

    tb = _pick_batch_tile(B)
    grid = (pl.cdiv(B, tb),)   # ragged last block handled by Pallas (masked writeback)

    # Weights/biases: tiny, fetched once -> cast in the wrapper.
    w1_bf = w1.astype(jnp.bfloat16)
    w2_bf = w2.astype(jnp.bfloat16)
    b1_2d = b1.reshape(1, hidden).astype(jnp.float32)
    b2_2d = b2.reshape(1, d_out).astype(jnp.float32)

    out = pl.pallas_call(
        decoder_kernel,
        out_shape=jax.ShapeDtypeStruct((B, d_out), jnp.float32),
        grid=grid,
        in_specs=[
            pl.BlockSpec((tb, d_in), lambda i: (i, 0)),       # x tile, pipelined
            pl.BlockSpec((d_in, hidden), lambda i: (0, 0)),   # W1: VMEM-resident
            pl.BlockSpec((1, hidden), lambda i: (0, 0)),      # b1
            pl.BlockSpec((hidden, d_out), lambda i: (0, 0)),  # W2: VMEM-resident
            pl.BlockSpec((1, d_out), lambda i: (0, 0)),       # b2
        ],
        out_specs=pl.BlockSpec((tb, d_out), lambda i: (i, 0)),
        compiler_params=pltpu.CompilerParams(
            dimension_semantics=("parallel",)),               # 2 TCs on v7x
    )(x.astype(jnp.float32), w1_bf, b1_2d, w2_bf, b2_2d)

    return out


def reference_forward(x, w1, b1, w2, b2):
    h = jnp.maximum(x @ w1 + b1, 0.0)
    return jax.nn.sigmoid(h @ w2 + b2)


if __name__ == "__main__":
    # Module hyper-parameters (small, consistent with the VAE decoder).
    latent_dim = 8
    n_classes = 4
    hidden_dim = 32
    output_dim = 64          # e.g. an 8x8 "image"
    batch = 2
    d_in = latent_dim + n_classes

    key = jax.random.PRNGKey(0)
    kx, kw1, kb1, kw2, kb2 = jax.random.split(key, 5)

    # Deterministic parameter init (nn.Linear shapes, pre-transposed to (in, out)).
    x = jax.random.normal(kx, (batch, d_in), dtype=jnp.float32)
    w1 = jax.random.normal(kw1, (d_in, hidden_dim), dtype=jnp.float32) * 0.1
    b1 = jax.random.normal(kb1, (hidden_dim,), dtype=jnp.float32) * 0.1
    w2 = jax.random.normal(kw2, (hidden_dim, output_dim), dtype=jnp.float32) * 0.1
    b2 = jax.random.normal(kb2, (output_dim,), dtype=jnp.float32) * 0.1

    out = decoder_forward(x, w1, b1, w2, b2)
    out = jax.block_until_ready(out)

    ref = reference_forward(x, w1, b1, w2, b2)
    assert out.shape == (batch, output_dim)
    # bf16 MXU inputs vs f32 reference -> loosened tolerance.
    assert jnp.allclose(out, ref, atol=2e-2, rtol=2e-2), "mismatch vs reference"

    print("KERNEL_OK")
</pallas_src>

<mosaic_0001>
module attributes {stable_mosaic.version = 11 : i64} {
  func.func @decoder_kernel(%arg0: i32, %arg1: memref<2x12xf32, #tpu.memory_space<vmem>>, %arg2: memref<12x32xbf16, #tpu.memory_space<vmem>>, %arg3: memref<1x32xf32, #tpu.memory_space<vmem>>, %arg4: memref<32x64xbf16, #tpu.memory_space<vmem>>, %arg5: memref<1x64xf32, #tpu.memory_space<vmem>>, %arg6: memref<2x64xf32, #tpu.memory_space<vmem>>) attributes {dimension_semantics = [#tpu.dimension_semantics<parallel>], iteration_bounds = array<i64: 1>, scalar_prefetch = 0 : i64, scratch_operands = 0 : i64, tpu.core_type = #tpu.core_type<tc>, window_params = [{transform_indices = @transform_0, window_bounds = array<i64: 2, 12>}, {pipeline_mode = #tpu.pipeline_mode<synchronous>, transform_indices = @transform_1, window_bounds = array<i64: 12, 32>}, {pipeline_mode = #tpu.pipeline_mode<synchronous>, transform_indices = @transform_2, window_bounds = array<i64: 1, 32>}, {pipeline_mode = #tpu.pipeline_mode<synchronous>, transform_indices = @transform_3, window_bounds = array<i64: 32, 64>}, {pipeline_mode = #tpu.pipeline_mode<synchronous>, transform_indices = @transform_4, window_bounds = array<i64: 1, 64>}, {transform_indices = @transform_5, window_bounds = array<i64: 2, 64>}]} {
    %c0 = arith.constant 0 : index
    %c0_0 = arith.constant 0 : index
    %0 = vector.load %arg1[%c0, %c0_0] : memref<2x12xf32, #tpu.memory_space<vmem>>, vector<2x12xf32>
    %1 = arith.truncf %0 : vector<2x12xf32> to vector<2x12xbf16>
    %c0_1 = arith.constant 0 : index
    %c0_2 = arith.constant 0 : index
    %2 = vector.load %arg2[%c0_1, %c0_2] : memref<12x32xbf16, #tpu.memory_space<vmem>>, vector<12x32xbf16>
    %cst = arith.constant dense<0.000000e+00> : vector<2x32xf32>
    %3 = tpu.matmul %1, %2, %cst {dimension_numbers = #tpu.dot_dimension_numbers<[1], [0], [0], [1], [0, 0, 1, 1], [], []>} : vector<2x12xbf16>, vector<12x32xbf16>, vector<2x32xf32> -> vector<2x32xf32>
    %c0_3 = arith.constant 0 : index
    %c0_4 = arith.constant 0 : index
    %4 = vector.load %arg3[%c0_3, %c0_4] : memref<1x32xf32, #tpu.memory_space<vmem>>, vector<1x32xf32>
    %5 = vector.broadcast %4 : vector<1x32xf32> to vector<2x32xf32>
    %6 = arith.addf %3, %5 : vector<2x32xf32>
    %cst_5 = arith.constant 0.000000e+00 : f32
    %7 = vector.broadcast %cst_5 : f32 to vector<2x32xf32>
    %8 = arith.maximumf %6, %7 : vector<2x32xf32>
    %9 = arith.truncf %8 : vector<2x32xf32> to vector<2x32xbf16>
    %c0_6 = arith.constant 0 : index
    %c0_7 = arith.constant 0 : index
    %10 = vector.load %arg4[%c0_6, %c0_7] : memref<32x64xbf16, #tpu.memory_space<vmem>>, vector<32x64xbf16>
    %cst_8 = arith.constant dense<0.000000e+00> : vector<2x64xf32>
    %11 = tpu.matmul %9, %10, %cst_8 {dimension_numbers = #tpu.dot_dimension_numbers<[1], [0], [0], [1], [0, 0, 1, 1], [], []>} : vector<2x32xbf16>, vector<32x64xbf16>, vector<2x64xf32> -> vector<2x64xf32>
    %c0_9 = arith.constant 0 : index
    %c0_10 = arith.constant 0 : index
    %12 = vector.load %arg5[%c0_9, %c0_10] : memref<1x64xf32, #tpu.memory_space<vmem>>, vector<1x64xf32>
    %13 = vector.broadcast %12 : vector<1x64xf32> to vector<2x64xf32>
    %14 = arith.addf %11, %13 : vector<2x64xf32>
    %15 = arith.negf %14 : vector<2x64xf32>
    %16 = math.exp %15 : vector<2x64xf32>
    %cst_11 = arith.constant 1.000000e+00 : f32
    %17 = vector.broadcast %cst_11 : f32 to vector<2x64xf32>
    %18 = arith.addf %17, %16 : vector<2x64xf32>
    %19 = arith.divf %17, %18 : vector<2x64xf32>
    %c0_12 = arith.constant 0 : index
    %c0_13 = arith.constant 0 : index
    %20 = vector.load %arg6[%c0_12, %c0_13] : memref<2x64xf32, #tpu.memory_space<vmem>>, vector<2x64xf32>
    tpu.vector_store %arg6[%c0_12, %c0_13], %19 {strides = array<i32>} : memref<2x64xf32, #tpu.memory_space<vmem>>, vector<2x64xf32>,
    return
  }
  func.func @transform_0(%arg0: i32) -> (i32, i32) {
    %c0_i32 = arith.constant 0 : i32
    %c0_i32_0 = arith.constant 0 : i32
    return %arg0, %c0_i32 : i32, i32
  }
  func.func @transform_1(%arg0: i32) -> (i32, i32) {
    %c0_i32 = arith.constant 0 : i32
    %c0_i32_0 = arith.constant 0 : i32
    %c0_i32_1 = arith.constant 0 : i32
    return %c0_i32, %c0_i32_0 : i32, i32
  }
  func.func @transform_2(%arg0: i32) -> (i32, i32) {
    %c0_i32 = arith.constant 0 : i32
    %c0_i32_0 = arith.constant 0 : i32
    %c0_i32_1 = arith.constant 0 : i32
    return %c0_i32, %c0_i32_0 : i32, i32
  }
  func.func @transform_3(%arg0: i32) -> (i32, i32) {
    %c0_i32 = arith.constant 0 : i32
    %c0_i32_0 = arith.constant 0 : i32
    %c0_i32_1 = arith.constant 0 : i32
    return %c0_i32, %c0_i32_0 : i32, i32
  }
  func.func @transform_4(%arg0: i32) -> (i32, i32) {
    %c0_i32 = arith.constant 0 : i32
    %c0_i32_0 = arith.constant 0 : i32
    %c0_i32_1 = arith.constant 0 : i32
    return %c0_i32, %c0_i32_0 : i32, i32
  }
  func.func @transform_5(%arg0: i32) -> (i32, i32) {
    %c0_i32 = arith.constant 0 : i32
    %c0_i32_0 = arith.constant 0 : i32
    return %arg0, %c0_i32 : i32, i32
  }
}

</mosaic_0001>

<bundles_post_ra>
// kernel: tpu_custom_call.1
= control target key start
LH: loop header
LB: loop body
LE: loop exit
PB: predicated region body
PF: predicated region fallthrough
CT: control target
= control target key end

     0   :  { %10 = vsyncpa [#allocation3], 0  ;;  %s365_s0 = inlined_call_operand.hbm [shape: f32[2,12], index: 0, kind: input, shape index: {}]   ;;  %s366_s1 = inlined_call_operand.hbm [shape: bf16[12,32], index: 1, kind: input, shape index: {}]   ;;  %s367_s2 = inlined_call_operand.vmem [shape: f32[1,32], index: 2, kind: input, shape index: {}]   ;;  %s368_s3 = inlined_call_operand.hbm [shape: bf16[32,64], index: 3, kind: input, shape index: {}]   ;;  %s369_s4 = inlined_call_operand.vmem [shape: f32[1,64], index: 4, kind: input, shape index: {}]   ;;  %s370_s5 = inlined_call_operand.hbm [shape: f32[2,64], index: 5, kind: output, shape index: {}]  }
   0x1   :  { %11 = vsyncpa [#allocation6], 0  ;;  %s28_s20 = sshll.u32 %s366_s1, 4  ;;  %s29_s20 = int_to_ptr.hbm [resolvable:$true] %s28_s20 }
   0x2   :  { %12 = vsyncpa [#allocation4], 0  ;;  %s311_s21 = smov [#allocation5]   ;;  %s18_s25 = sshll.u32 %s365_s0, 4  ;;  %s19_s25 = int_to_ptr.hbm [resolvable:$true] %s18_s25 }
   0x3   :  { %s30_s22 = sshll.u32 %s311_s21, 4  ;;  %s312_s26 = smov 64   ;;  %s31_s22 = int_to_ptr.vmem [resolvable:$true] %s30_s22 }
   0x4   :  { %s313_s27 = smov 4   ;;  %s314_s28 = smov [#allocation2]  }
   0x5   :  { %36 = dma.hbm_to_vmem [thread:$0]  %s29_s20, 128, %s31_s22, [#allocation6], %s312_s26, %s312_s26, %s313_s27  }
   0x6   :  { %s20_s29 = sshll.u32 %s314_s28, 4  ;;  %s43_s7 = sshll.u32 %s368_s3, 4  ;;  %s21_s29 = int_to_ptr.vmem [resolvable:$true] %s20_s29  ;;  %s44_s7 = int_to_ptr.hbm [resolvable:$true] %s43_s7 }
   0x7   :  { %23 = dma.hbm_to_vmem [thread:$0]  %s19_s25, 32, %s21_s29, [#allocation3]  }
   0x8   :  { %s315_s1 = smov [#allocation7]  }
   0x9   :  { %s45_s8 = sshll.u32 %s315_s1, 4  ;;  %s46_s8 = int_to_ptr.vmem [resolvable:$true] %s45_s8 }
   0xa   :  { %51 = dma.hbm_to_vmem [thread:$0]  %s44_s7, 256, %s46_s8, [#allocation6], %s312_s26, %s312_s26, %s313_s27  }
   0xb   :  { %305 = dma.done.wait [#allocation3], 32  }
   0xc   :  { %306 = vsyncadd [#allocation3], 4294967264 }
   0xd   :  { %307 = dma.done.wait [#allocation6], 384  }
   0xe   :  { %308 = vsyncadd [#allocation6], 4294966912  ;;  %vm84_vm0 = vcmask 1045504   ;;  %v181_v0 = vld [vmem:[#allocation5] sm:$0xf]  ;;  %vm80_vm1 = vcmask 97280  }
   0xf   :  { %v194_v1 = vld [vmem:[#allocation5] sm:$0x30]  ;;  %v67_v2 = vld [vmem:[#allocation2] sm:$0x3]  ;;  %v196_v6 = vld [vmem:[#allocation7 + $0x8] sm:$0xff]  ;;  %vm123_vm2 = vcmask 261120  }
  0x10   :  { %v182_v3 = vor.u32 %v194_v1, %v181_v0  ;;  %v68_v5 = vpack.c.bf16 %v67_v2, %v67_v2  ;;  %133 = vmatpush.bf16.msra.mxu1 %v196_v6  ;;  %v195_v7 = vld [vmem:[#allocation7] sm:$0xff]  ;;  %v203_v8 = vld [vmem:[%s367_s2] ss:$0 sm:$0xff]  ;;  %s316_s2 = smov [#allocation8]   ;;  %vm159_vm6 = vcmask 517120  }
  0x11   :  { %v204_v14 = vld [vmem:[%s369_s4] ss:$0 sm:$0xff]  ;;  %s166_s11 = sshll.u32 %s316_s2, 4  ;;  %s168_s4 = sshll.u32 %s370_s5, 4  ;;  %s167_s11 = int_to_ptr.vmem [resolvable:$true] %s166_s11  ;;  %s169_s4 = int_to_ptr.hbm [resolvable:$true] %s168_s4 }
  0x12   :  { %v86_v4 = vsel %vm84_vm0, %v182_v3, 0 }
  0x13   :  { %95 = vmatpush.bf16.msra.mxu0 %v86_v4 }
  0x14   :  { %134 = vmatpush.bf16.msra.mxu1 %v195_v7 }
  0x16   :  { %183 = vmatmul.msk.bf16.vlgmr.msra.gmra.mxu0 %vm80_vm1, %v68_v5 }
  0x93   :  { %v97_v9 = vpop.f32.mrf.mxu0 }
  0x94   :  { %v98_v10 = vadd.f32 %v203_v8, %v97_v9 }
  0x96   :  { %v101_v11 = vmax.f32 %v98_v10, 0.0 }
  0x98   :  { %v102_v12 = vpack.c.bf16 %v101_v11, %v101_v11 }
  0x9a   :  { %192 = vmatmul.msk.bf16.vlgmr.msra.gmra.mxu1 %vm123_vm2, %v102_v12 }
  0x9b   :  { %v99_v13 = vpop.f32.mrf.mxu0 }
 0x117   :  { %v136_v15 = vpop.f32.mrf.mxu1 }
 0x118   :  { %v137_v16 = vadd.f32 %v204_v14, %v136_v15 }
 0x11a   :  { %v193_v17 = vmul.f32 -1.442695, %v137_v16 }
 0x11c   :  { %205 = vpow2.f32 %v193_v17 }
 0x11f   :  { %v138_v18 = vpop.f32.mrf.mxu1 }
 0x122   :  { %v206_v19 = vpop.eup %205 }
 0x123   :  { %v143_v20 = vadd.f32 1.0, %v206_v19 }
 0x125   :  { %207 = vrcp.f32 %v143_v20  ;;  %v155_v24 = vand.u32 2147483648, %v143_v20  ;;  %v153_v26 = vand.u32 2147483647, %v143_v20  ;;  %vm149_vm4 = vweird.f32 %v143_v20 }
 0x127   :  { %v156_v28 = vor.u32 1.1754944e-38, %v155_v24  ;;  %vm154_vm7 = vcmp.eq.f32.partialorder %v153_v26, 8.507059e+37 }
 0x12b   :  { %v208_v21 = vpop.eup %207 }
 0x12c   :  { %v145_v22 = vmul.f32 %v208_v21, %v143_v20  ;;  %vm150_vm3 = vweird.f32 %v208_v21 }
 0x12d   :  { %vm151_vm5 = vmor %vm149_vm4, %vm150_vm3 }
 0x12e   :  { %v146_v23 = vsub.f32 1.0, %v145_v22 }
 0x130   :  { %v147_v25 = vmul.f32 %v208_v21, %v146_v23 }
 0x132   :  { %v148_v27 = vadd.f32 %v208_v21, %v147_v25 }
 0x134   :  { %v152_v29 = vsel %vm151_vm5, %v208_v21, %v148_v27 }
 0x135   :  { %v157_v30 = vsel %vm154_vm7, %v156_v28, %v152_v29 }
 0x136   :  { %160 = vst.msk [vmem:[#allocation8] sm:$0x3] %vm159_vm6, %v157_v30 }
 0x137   :  { %171 = dma.vmem_to_hbm [thread:$0]  %s167_s11, 32, %s169_s4, [#allocation4]  }
 0x138   :  { %309 = dma.done.wait [#allocation4], 32  }
 0x139   :  { %310 = vsyncadd [#allocation4], 4294967264 }
 0x13a   :  { %176 = vsyncpa [#allocation3], 1 }
 0x13b   :  { %177 = vsyncpa [#allocation6], 1 }
 0x13c   :  { %178 = vsyncpa [#allocation4], 1 }

</bundles_post_ra>
